<compile_context>
chip_gen: v5e
topology: v5e:2x2
jax: 0.10.0
libtpu: 0.0.40
codegen_flags: <defaults>
</compile_context>

<pallas_src>
import functools

import jax
import jax.numpy as jnp
from jax.experimental import pallas as pl
from jax.experimental.pallas import tpu as pltpu

LANES = 128
SUBLANES = 8
CHUNK_ROWS = 512          # inner-loop sub-slice: bounds live ranges, 512*128*4B = 256 KiB/interm.


def _chip_config():
    """(max_block_rows, core_splits, vmem_limit_bytes) per TPU generation, safe fallback."""
    kind = ""
    try:
        kind = jax.devices()[0].device_kind.lower()
    except Exception:
        pass
    if "v7" in kind:                       # 2 TCs/chip, 64 MiB VMEM/TC, ~3.2 TB/s HBM/TC
        return 8192, 2, 48 * 1024 * 1024   # 2 in x 2 buf x 4 MiB = 16 MiB windows
    if "v6" in kind:                       # 1 TC, 128 MiB VMEM, ~1.4 TB/s
        return 8192, 1, 48 * 1024 * 1024
    if ("v4" in kind) or ("v5p" in kind):  # megacore chips: 2 TCs share the chip
        return 4096, 2, 32 * 1024 * 1024
    return 4096, 1, 32 * 1024 * 1024       # v5e / unknown: conservative


def _pow_static(z, gamma):
    """z ** gamma for a static Python gamma, avoiding the exp/log pow chain when possible."""
    g = float(gamma)
    if g > 0.0 and g == int(g):                       # integer exponent -> repeated multiply
        out = z
        for _ in range(int(g) - 1):
            out = out * z
        return out
    if g > 0.0 and 2.0 * g == int(2.0 * g):           # half-integer exponent -> sqrt * multiplies
        out = jnp.sqrt(z)
        for _ in range(int(g - 0.5)):
            out = out * z
        return out
    return jnp.power(z, g)                            # generic fallback (2 EUP ops)


def _chunk_loss_sum(pred_ref, true_ref, row0, rows, *, gamma, alpha, masked, valid, elem0):
    """Focal loss summed over rows [row0, row0+rows) of the current block -> (8,128) partial."""
    x = pred_ref[pl.ds(row0, rows), :].astype(jnp.float32)
    y = true_ref[pl.ds(row0, rows), :].astype(jnp.float32)

    # One exp per element, shared by the numerically stable BCE and the sigmoid.
    e = jnp.exp(-jnp.abs(x))                                # exp(-|x|) in (0, 1]
    bce = jnp.maximum(x, 0.0) - x * y + jnp.log1p(e)        # == torch BCEWithLogitsLoss('none')
    r = pl.reciprocal(1.0 + e, approx=False)                # EUP already carries exp/log1p/sqrt
    p = jnp.where(x >= 0.0, r, e * r)                       # sigmoid(x)

    # Folded VPU algebra:  1 - p_t = y + p - 2*y*p ;  alpha_factor = (1-a) + y*(2a-1)
    z = jnp.maximum(y + p - 2.0 * (y * p), 0.0)             # clamp rounding before sqrt
    af = (1.0 - alpha) + y * (2.0 * alpha - 1.0)
    loss = bce * af * _pow_static(z, gamma)

    if masked:
        rid = jax.lax.broadcasted_iota(jnp.int32, (rows, LANES), 0)
        cid = jax.lax.broadcasted_iota(jnp.int32, (rows, LANES), 1)
        keep = rid * LANES + cid < (valid - elem0)
        loss = jnp.where(keep, loss, 0.0)

    # (rows,128) -> (8,128) via pure VPU adds; the final cross-lane reduce is in the wrapper.
    return loss.reshape(rows // SUBLANES, SUBLANES, LANES).sum(axis=0)


def _focal_kernel(pred_ref, true_ref, out_ref, *, gamma, alpha, n, block_rows,
                  blocks_per_core, tile_elems, chunk_rows, needs_mask):
    c = pl.program_id(0)          # core-split axis ("parallel"); >1 only on 2-TC chips
    j = pl.program_id(1)          # reduction axis ("arbitrary"); out block resident across j

    @pl.when(j == 0)
    def _():
        out_ref[...] = jnp.zeros_like(out_ref)

    full_chunks = block_rows // chunk_rows
    rem_rows = block_rows - full_chunks * chunk_rows        # static; multiple of 8

    def block_sum(masked, valid):
        kw = dict(gamma=gamma, alpha=alpha, masked=masked, valid=valid)

        def body(i, acc):
            row0 = pl.multiple_of(i * chunk_rows, SUBLANES)
            return acc + _chunk_loss_sum(pred_ref, true_ref, row0, chunk_rows,
                                         elem0=row0 * LANES, **kw)

        if full_chunks > 1:
            acc = jax.lax.fori_loop(0, full_chunks, body,
                                    jnp.zeros((SUBLANES, LANES), jnp.float32))
        elif full_chunks == 1:
            acc = _chunk_loss_sum(pred_ref, true_ref, 0, chunk_rows, elem0=0, **kw)
        else:
            acc = jnp.zeros((SUBLANES, LANES), jnp.float32)
        if rem_rows:
            row0 = full_chunks * chunk_rows                  # static offset
            acc = acc + _chunk_loss_sum(pred_ref, true_ref, row0, rem_rows,
                                        elem0=row0 * LANES, **kw)
        return acc

    if needs_mask:
        # Valid element count for this block; n / tile_elems are static Python ints
        # (wrapper asserts everything fits int32).
        gidx = c * blocks_per_core + j
        valid = n - gidx * tile_elems        # may be <= 0 for phantom blocks of the core split

        @pl.when(valid >= tile_elems)        # full block: zero mask overhead
        def _():
            out_ref[0] += block_sum(False, 0)

        @pl.when(jnp.logical_and(valid > 0, valid < tile_elems))   # ragged last block
        def _():
            out_ref[0] += block_sum(True, valid)
        # valid <= 0 (phantom block): skip all VPU/EUP work; contribution is zero.
    else:
        out_ref[0] += block_sum(False, 0)


def _focal_elem(pred, true, gamma, alpha):
    """Plain-jnp elementwise focal loss; used only for the <=1023-element ragged tail."""
    x = pred.astype(jnp.float32)
    y = true.astype(jnp.float32)
    bce = jnp.maximum(x, 0.0) - x * y + jnp.log1p(jnp.exp(-jnp.abs(x)))
    p = jax.nn.sigmoid(x)
    z = jnp.maximum(y + p - 2.0 * (y * p), 0.0)
    af = (1.0 - alpha) + y * (2.0 * alpha - 1.0)
    return bce * af * _pow_static(z, gamma)


def focal_loss(pred, true, gamma=1.5, alpha=0.25, reduction="mean", block_rows=None):
    """Pallas TPU focal loss. pred = logits, true = targets in [0,1]; any shape.

    Inputs may be bf16/f16/f32 (or int targets): they stay narrow in HBM and are cast
    to f32 in-register inside the kernel (do NOT astype in the caller — extra HBM pass).
    """
    # TODO(synk): reduction='none' (elementwise output) path not implemented.
    assert reduction in ("mean", "sum")
    assert pred.shape == true.shape
    n = int(pred.size)
    assert n > 0

    max_rows, core_splits, vmem_limit = _chip_config()
    if block_rows is None:
        block_rows = max_rows
    block_rows = int(block_rows)
    assert block_rows > 0 and block_rows % 32 == 0   # keeps bf16/int8 input tilings legal

    flat_p = pred.reshape(-1)    # contiguous reshape: no copy; dtype untouched (cast in-kernel)
    flat_t = true.reshape(-1)

    # Aligned prefix goes through the kernel; the (<1024-element) ragged tail is computed
    # directly in jnp.  This replaces the old jnp.pad path, which forced a full HBM
    # read+write copy of BOTH inputs (~2x traffic on a memory-bound op).
    align = SUBLANES * LANES
    n_main = n - (n % align)
    total = jnp.zeros((), jnp.float32)

    if n_main > 0:
        assert n_main < 2**31 - 2 * block_rows * LANES     # in-kernel index math is int32
        m_rows = n_main // LANES                           # multiple of 8 by construction
        p2 = flat_p[:n_main].reshape(m_rows, LANES)        # prefix slice+reshape: no copy
        t2 = flat_t[:n_main].reshape(m_rows, LANES)

        blk = min(block_rows, m_rows)                      # full extent if the array is small
        tile_elems = blk * LANES
        chunk_rows = min(CHUNK_ROWS, blk)
        num_blocks = -(-m_rows // blk)
        # 2-way split only on 2-TC chips and only with enough blocks to avoid imbalance.
        num_cores = core_splits if (core_splits > 1 and num_blocks >= 4) else 1
        blocks_per_core = -(-num_blocks // num_cores)
        needs_mask = (n_main % tile_elems != 0) or (num_blocks % num_cores != 0)

        def in_map(c, j):
            # Clamp phantom blocks (odd num_blocks on the core split) to a valid block
            # index; their contribution is skipped in-kernel.
            return (jnp.minimum(c * blocks_per_core + j, num_blocks - 1), 0)

        kernel = functools.partial(
            _focal_kernel, gamma=float(gamma), alpha=float(alpha), n=n_main,
            block_rows=blk, blocks_per_core=blocks_per_core,
            tile_elems=tile_elems, chunk_rows=chunk_rows, needs_mask=needs_mask)

        # Per-core partial sums, kept lane-dense (8,128) so stores are unmasked and the
        # in-kernel reduction stays on the VPU.
        partials = pl.pallas_call(
            kernel,
            out_shape=jax.ShapeDtypeStruct((num_cores, SUBLANES, LANES), jnp.float32),
            grid_spec=pltpu.PrefetchScalarGridSpec(
                num_scalar_prefetch=0,
                grid=(num_cores, blocks_per_core),
                in_specs=[
                    pl.BlockSpec((blk, LANES), in_map),
                    pl.BlockSpec((blk, LANES), in_map),
                ],
                out_specs=pl.BlockSpec((1, SUBLANES, LANES), lambda c, j: (c, 0, 0)),
            ),
            compiler_params=pltpu.CompilerParams(
                dimension_semantics=("parallel", "arbitrary"),
                vmem_limit_bytes=vmem_limit),
        )(p2, t2)
        total = jnp.sum(partials)          # tiny (num_cores,8,128) final reduce

    if n_main < n:
        total = total + jnp.sum(_focal_elem(flat_p[n_main:], flat_t[n_main:],
                                            float(gamma), float(alpha)))

    if reduction == "mean":
        return total / n
    return total


def _focal_loss_ref(pred, true, gamma=1.5, alpha=0.25, reduction="mean"):
    x = pred.astype(jnp.float32)
    y = true.astype(jnp.float32)
    bce = jnp.maximum(x, 0.0) - x * y + jnp.log1p(jnp.exp(-jnp.abs(x)))
    p = jax.nn.sigmoid(x)
    p_t = y * p + (1 - y) * (1 - p)
    af = y * alpha + (1 - y) * (1 - alpha)
    mf = (1.0 - p_t) ** gamma
    loss = bce * af * mf
    return jnp.mean(loss) if reduction == "mean" else jnp.sum(loss)


if __name__ == "__main__":
    key = jax.random.PRNGKey(0)

    # (batch, channels, H, W) shapes consistent with a detection-head output.
    #  1) clean single-block path (n divisible by 1024)
    #  2) ragged n: pallas prefix (4096) + jnp tail (749)
    #  3) bf16 inputs on the single-block path (narrow HBM dtype, in-kernel cast)
    #  4) forced blk=1024 -> multi-block grid with inner fori_loop + masked last block
    #  5) forced blk=768  -> remainder-chunk path + masked last block (+ even 2-way split)
    #  6) forced blk=384  -> 7 blocks: masked last block, phantom-block skip on 2-TC chips
    cases = [
        ((2, 4, 16, 16), jnp.float32, None),
        ((3, 5, 17, 19), jnp.float32, None),
        ((2, 4, 16, 16), jnp.bfloat16, None),
        ((2, 8, 128, 160), jnp.float32, 1024),
        ((2, 8, 128, 160), jnp.float32, 768),
        ((2, 8, 128, 160), jnp.float32, 384),
    ]
    for shape, dtype, blk in cases:
        key, k1, k2 = jax.random.split(key, 3)
        pred = jax.random.normal(k1, shape, dtype=jnp.float32).astype(dtype)   # logits
        true = (jax.random.uniform(k2, shape) > 0.7).astype(dtype)             # binary targets

        out = focal_loss(pred, true, gamma=1.5, alpha=0.25, reduction="mean",
                         block_rows=blk)
        out = jax.block_until_ready(out)
        ref = _focal_loss_ref(pred, true, gamma=1.5, alpha=0.25, reduction="mean")

        assert jnp.isfinite(out), ("non-finite output", shape, dtype, out)
        assert jnp.allclose(out, ref, rtol=1e-4, atol=1e-6), (shape, dtype, out, ref)

    print("KERNEL_OK")
</pallas_src>

<mosaic_0001>
module attributes {stable_mosaic.version = 11 : i64} {
  func.func @_focal_kernel(%arg0: i32, %arg1: i32, %arg2: memref<16x128xf32, #tpu.memory_space<vmem>>, %arg3: memref<16x128xf32, #tpu.memory_space<vmem>>, %arg4: memref<1x8x128xf32, #tpu.memory_space<vmem>>) attributes {dimension_semantics = [#tpu.dimension_semantics<parallel>, #tpu.dimension_semantics<arbitrary>], iteration_bounds = array<i64: 1, 1>, scalar_prefetch = 0 : i64, scratch_operands = 0 : i64, tpu.core_type = #tpu.core_type<tc>, window_params = [{transform_indices = @transform_0, window_bounds = array<i64: 16, 128>}, {transform_indices = @transform_1, window_bounds = array<i64: 16, 128>}, {transform_indices = @transform_2, window_bounds = array<i64: 1, 8, 128>}]} {
    %c0_i32 = arith.constant 0 : i32
    %0 = arith.cmpi eq, %arg1, %c0_i32 : i32
    %1 = arith.extui %0 : i1 to i32
    %c0_i32_0 = arith.constant 0 : i32
    %2 = arith.cmpi ne, %1, %c0_i32_0 : i32
    scf.if %2 {
      %cst_18 = arith.constant 0.000000e+00 : f32
      %45 = vector.broadcast %cst_18 : f32 to vector<1x8x128xf32>
      %c0_19 = arith.constant 0 : index
      %c0_20 = arith.constant 0 : index
      %c0_21 = arith.constant 0 : index
      %46 = vector.load %arg4[%c0_19, %c0_20, %c0_21] : memref<1x8x128xf32, #tpu.memory_space<vmem>>, vector<1x8x128xf32>
      tpu.vector_store %arg4[%c0_19, %c0_20, %c0_21], %45 {strides = array<i32>} : memref<1x8x128xf32, #tpu.memory_space<vmem>>, vector<1x8x128xf32>,
    } else {
    }
    %c0 = arith.constant 0 : index
    %c0_1 = arith.constant 0 : index
    %c0_2 = arith.constant 0 : index
    %3 = vector.load %arg4[%c0, %c0_1, %c0_2] : memref<1x8x128xf32, #tpu.memory_space<vmem>>, vector<1x8x128xf32>
    %4 = vector.shape_cast %3 : vector<1x8x128xf32> to vector<8x128xf32>
    %c0_3 = arith.constant 0 : index
    %c0_4 = arith.constant 0 : index
    %5 = vector.load %arg2[%c0_3, %c0_4] : memref<16x128xf32, #tpu.memory_space<vmem>>, vector<16x128xf32>
    %c0_5 = arith.constant 0 : index
    %c0_6 = arith.constant 0 : index
    %6 = vector.load %arg3[%c0_5, %c0_6] : memref<16x128xf32, #tpu.memory_space<vmem>>, vector<16x128xf32>
    %7 = math.absf %5 : vector<16x128xf32>
    %cst = arith.constant 0.000000e+00 : f32
    %8 = vector.broadcast %cst : f32 to vector<16x128xf32>
    %9 = arith.subf %8, %7 : vector<16x128xf32>
    %10 = math.exp %9 : vector<16x128xf32>
    %cst_7 = arith.constant 0.000000e+00 : f32
    %11 = vector.broadcast %cst_7 : f32 to vector<16x128xf32>
    %12 = arith.maximumf %5, %11 : vector<16x128xf32>
    %13 = arith.mulf %5, %6 : vector<16x128xf32>
    %14 = arith.subf %12, %13 : vector<16x128xf32>
    %15 = math.log1p %10 : vector<16x128xf32>
    %16 = arith.addf %14, %15 : vector<16x128xf32>
    %cst_8 = arith.constant 1.000000e+00 : f32
    %17 = vector.broadcast %cst_8 : f32 to vector<16x128xf32>
    %18 = arith.addf %17, %10 : vector<16x128xf32>
    %19 = tpu.reciprocal %18 : vector<16x128xf32> -> vector<16x128xf32>
    %cst_9 = arith.constant 0.000000e+00 : f32
    %20 = vector.broadcast %cst_9 : f32 to vector<16x128xf32>
    %21 = arith.cmpf oge, %5, %20 : vector<16x128xf32>
    %22 = arith.mulf %10, %19 : vector<16x128xf32>
    %23 = arith.select %21, %19, %22 : vector<16x128xi1>, vector<16x128xf32>
    %24 = arith.addf %6, %23 : vector<16x128xf32>
    %25 = arith.mulf %6, %23 : vector<16x128xf32>
    %cst_10 = arith.constant 2.000000e+00 : f32
    %26 = vector.broadcast %cst_10 : f32 to vector<16x128xf32>
    %27 = arith.mulf %26, %25 : vector<16x128xf32>
    %28 = arith.subf %24, %27 : vector<16x128xf32>
    %cst_11 = arith.constant 0.000000e+00 : f32
    %29 = vector.broadcast %cst_11 : f32 to vector<16x128xf32>
    %30 = arith.maximumf %28, %29 : vector<16x128xf32>
    %cst_12 = arith.constant -5.000000e-01 : f32
    %31 = vector.broadcast %cst_12 : f32 to vector<16x128xf32>
    %32 = arith.mulf %6, %31 : vector<16x128xf32>
    %cst_13 = arith.constant 7.500000e-01 : f32
    %33 = vector.broadcast %cst_13 : f32 to vector<16x128xf32>
    %34 = arith.addf %33, %32 : vector<16x128xf32>
    %35 = arith.mulf %16, %34 : vector<16x128xf32>
    %36 = math.sqrt %30 : vector<16x128xf32>
    %37 = arith.mulf %36, %30 : vector<16x128xf32>
    %38 = arith.mulf %35, %37 : vector<16x128xf32>
    %39 = vector.shape_cast %38 : vector<16x128xf32> to vector<2x8x128xf32>
    %cst_14 = arith.constant dense<0.000000e+00> : vector<8x128xf32>
    %40 = vector.multi_reduction <add>, %39, %cst_14 [0] : vector<2x8x128xf32> to vector<8x128xf32>
    %41 = arith.addf %4, %40 : vector<8x128xf32>
    %c0_15 = arith.constant 0 : index
    %c0_16 = arith.constant 0 : index
    %c0_17 = arith.constant 0 : index
    %42 = vector.load %arg4[%c0_15, %c0_16, %c0_17] : memref<1x8x128xf32, #tpu.memory_space<vmem>>, vector<1x8x128xf32>
    %43 = vector.shape_cast %42 : vector<1x8x128xf32> to vector<8x128xf32>
    %44 = vector.shape_cast %41 : vector<8x128xf32> to vector<1x8x128xf32>
    tpu.vector_store %arg4[%c0_15, %c0_16, %c0_17], %44 {strides = array<i32>} : memref<1x8x128xf32, #tpu.memory_space<vmem>>, vector<1x8x128xf32>,
    return
  }
  func.func @transform_0(%arg0: i32, %arg1: i32) -> (i32, i32) {
    %c1_i32 = arith.constant 1 : i32
    %0 = arith.muli %arg0, %c1_i32 : i32
    %1 = arith.addi %0, %arg1 : i32
    %c0_i32 = arith.constant 0 : i32
    %2 = arith.minsi %1, %c0_i32 : i32
    %c0_i32_0 = arith.constant 0 : i32
    %c0_i32_1 = arith.constant 0 : i32
    return %2, %c0_i32_0 : i32, i32
  }
  func.func @transform_1(%arg0: i32, %arg1: i32) -> (i32, i32) {
    %c1_i32 = arith.constant 1 : i32
    %0 = arith.muli %arg0, %c1_i32 : i32
    %1 = arith.addi %0, %arg1 : i32
    %c0_i32 = arith.constant 0 : i32
    %2 = arith.minsi %1, %c0_i32 : i32
    %c0_i32_0 = arith.constant 0 : i32
    %c0_i32_1 = arith.constant 0 : i32
    return %2, %c0_i32_0 : i32, i32
  }
  func.func @transform_2(%arg0: i32, %arg1: i32) -> (i32, i32, i32) {
    %c0_i32 = arith.constant 0 : i32
    %c0_i32_0 = arith.constant 0 : i32
    %c0_i32_1 = arith.constant 0 : i32
    return %arg0, %c0_i32, %c0_i32_0 : i32, i32, i32
  }
}

</mosaic_0001>

<bundles_post_ra>
// kernel: tpu_custom_call.1
= control target key start
LH: loop header
LB: loop body
LE: loop exit
PB: predicated region body
PF: predicated region fallthrough
CT: control target
= control target key end

     0   :  { %7 = vsyncpa [#allocation3], 0  ;;  %s380_s0 = inlined_call_operand.hbm [shape: f32[16,128], index: 0, kind: input, shape index: {}]   ;;  %s381_s1 = inlined_call_operand.hbm [shape: f32[16,128], index: 1, kind: input, shape index: {}]   ;;  %s382_s2 = inlined_call_operand.hbm [shape: f32[1,8,128], index: 2, kind: output, shape index: {}]  }
   0x1   :  { %8 = vsyncpa [#allocation6], 0 }
   0x2   :  { %9 = vsyncpa [#allocation4], 0  ;;  %s20_s11 = sshll.u32 %s380_s0, 4  ;;  %s313_s12 = smov [#allocation2]   ;;  %s21_s11 = int_to_ptr.hbm [resolvable:$true] %s20_s11 }
   0x3   :  { %s22_s13 = sshll.u32 %s313_s12, 4  ;;  %s39_s16 = sshll.u32 %s381_s1, 4  ;;  %s23_s13 = int_to_ptr.vmem [resolvable:$true] %s22_s13  ;;  %s40_s16 = int_to_ptr.hbm [resolvable:$true] %s39_s16 }
   0x4   :  { %s314_s17 = smov 128   ;;  %s315_s18 = smov 8  }
   0x5   :  { %28 = dma.hbm_to_vmem [thread:$0]  %s21_s11, 256, %s23_s13, [#allocation3], %s314_s17, %s314_s17, %s315_s18  }
   0x6   :  { %s316_s19 = smov [#allocation5]  }
   0x7   :  { %s41_s20 = sshll.u32 %s316_s19, 4  ;;  %s42_s20 = int_to_ptr.vmem [resolvable:$true] %s41_s20 }
   0x8   :  { %47 = dma.hbm_to_vmem [thread:$0]  %s40_s16, 256, %s42_s20, [#allocation6], %s314_s17, %s314_s17, %s315_s18  }
   0x9   :  { %307 = dma.done.wait [#allocation3], 256  }
   0xa   :  { %308 = vsyncadd [#allocation3], 4294967040 }
   0xb   :  { %309 = dma.done.wait [#allocation6], 256  }
   0xc   :  { %310 = vsyncadd [#allocation6], 4294967040  ;;  %v339_v0 = vld [vmem:[#allocation2] sm:$0xff]  ;;  %v341_v1 = vld [vmem:[#allocation2 + $0x8] sm:$0xff]  ;;  %s317_s0 = smov [#allocation7]   ;;  %s198_s23 = sshll.u32 %s382_s2, 4  ;;  %s199_s23 = int_to_ptr.hbm [resolvable:$true] %s198_s23 }
   0xd   :  { %v74_v2 = vand.u32 2147483647, %v339_v0  ;;  %v75_v3 = vand.u32 2147483647, %v341_v1  ;;  %vm138_vm8 = vcmp.ge.f32.partialorder %v339_v0, 0.0  ;;  %v72_v31 = vld [vmem:[#allocation5] sm:$0xff] }
   0xe   :  { %vm139_vm9 = vcmp.ge.f32.partialorder %v341_v1, 0.0  ;;  %v73_v34 = vld [vmem:[#allocation5 + $0x8] sm:$0xff]  ;;  %v82_v58 = vmax.f32 %v339_v0, 0.0  ;;  %v83_v59 = vmax.f32 %v341_v1, 0.0  ;;  %v84_v60 = vmul.f32 %v72_v31, %v339_v0  ;;  %s196_s1 = sshll.u32 %s317_s0, 4  ;;  %s197_s1 = int_to_ptr.vmem [resolvable:$true] %s196_s1 }
   0xf   :  { %v76_v4 = vsub.f32 0.0, %v74_v2  ;;  %v77_v5 = vsub.f32 0.0, %v75_v3  ;;  %v85_v62 = vmul.f32 %v73_v34, %v341_v1  ;;  %v155_v1 = vmul.f32 -0.5, %v73_v34 }
  0x11   :  { %v78_v6 = vmul.f32 1.442695, %v76_v4  ;;  %v80_v7 = vmul.f32 1.442695, %v77_v5 }
  0x13   :  { %219 = vpow2.f32 %v78_v6 }
  0x14   :  { %221 = vpow2.f32 %v80_v7 }
  0x19   :  { %v345_v8 = vpop.eup %219 }
  0x1a   :  { %v347_v9 = vpop.eup %221  ;;  %v88_v10 = vadd.f32 1.0, %v345_v8  ;;  %v91_v48 = vmul.f32 -0.5, %v345_v8  ;;  %v94_v53 = vand.u32 2147483647, %v345_v8 }
  0x1b   :  { %v97_v11 = vadd.f32 1.0, %v347_v9  ;;  %v100_v49 = vmul.f32 -0.5, %v347_v9  ;;  %v103_v56 = vand.u32 2147483647, %v347_v9 }
  0x1c   :  { %223 = vrcp.f32 %v88_v10  ;;  %vm115_vm0 = vweird.f32 %v88_v10  ;;  %v121_v15 = vand.u32 2147483648, %v88_v10  ;;  %v119_v18 = vand.u32 2147483647, %v88_v10 }
  0x1d   :  { %225 = vrcp.f32 %v97_v11  ;;  %v135_v19 = vand.u32 2147483648, %v97_v11  ;;  %vm129_vm2 = vweird.f32 %v97_v11  ;;  %v133_v21 = vand.u32 2147483647, %v97_v11 }
  0x1e   :  { %v122_v23 = vor.u32 1.1754944e-38, %v121_v15  ;;  %vm120_vm5 = vcmp.eq.f32.partialorder %v119_v18, 8.507059e+37  ;;  %227 = vlog2.f32 %v88_v10  ;;  %v92_v51 = vadd.f32 1.0, %v91_v48 }
  0x1f   :  { %v136_v26 = vor.u32 1.1754944e-38, %v135_v19  ;;  %vm134_vm7 = vcmp.eq.f32.partialorder %v133_v21, 8.507059e+37  ;;  %229 = vlog2.f32 %v97_v11  ;;  %v101_v54 = vadd.f32 1.0, %v100_v49 }
  0x20   :  { %v93_v2 = vmul.f32 %v345_v8, %v92_v51  ;;  %vm364_vm10 = vcmp.lt.f32.partialorder %v94_v53, 0.0004427343  ;;  %vm369_vm11 = vcmp.lt.f32.partialorder %v103_v56, 0.0004427343 }
  0x21   :  { %v102_v6 = vmul.f32 %v347_v9, %v101_v54 }
  0x22   :  { %v224_v12 = vpop.eup %223 }
  0x23   :  { %v226_v13 = vpop.eup %225  ;;  %v111_v14 = vmul.f32 %v224_v12, %v88_v10  ;;  %vm116_vm1 = vweird.f32 %v224_v12 }
  0x24   :  { %v125_v16 = vmul.f32 %v226_v13, %v97_v11  ;;  %vm130_vm3 = vweird.f32 %v226_v13  ;;  %vm117_vm4 = vmor %vm115_vm0, %vm116_vm1  ;;  %v228_v50 = vpop.eup %227  ;;  %v86_v11 = vsub.f32 %v82_v58, %v84_v60 }
  0x25   :  { %v112_v17 = vsub.f32 1.0, %v111_v14  ;;  %vm131_vm6 = vmor %vm129_vm2, %vm130_vm3  ;;  %v230_v52 = vpop.eup %229  ;;  %v90_v63 = vmul.f32 0.6931472, %v228_v50  ;;  %v87_v14 = vsub.f32 %v83_v59, %v85_v62 }
  0x26   :  { %v126_v20 = vsub.f32 1.0, %v125_v16  ;;  %v99_v5 = vmul.f32 0.6931472, %v230_v52 }
  0x27   :  { %v113_v22 = vmul.f32 %v224_v12, %v112_v17 }
  0x28   :  { %v127_v24 = vmul.f32 %v226_v13, %v126_v20  ;;  %v105_v16 = vsel %vm369_vm11, %v102_v6, %v99_v5  ;;  %v157_v20 = vadd.f32 0.75, %v155_v1 }
  0x29   :  { %v114_v25 = vadd.f32 %v224_v12, %v113_v22  ;;  %v107_v22 = vadd.f32 %v105_v16, %v87_v14 }
  0x2a   :  { %v128_v27 = vadd.f32 %v226_v13, %v127_v24 }
  0x2b   :  { %v118_v28 = vsel %vm117_vm4, %v224_v12, %v114_v25  ;;  %v154_v12 = vmul.f32 -0.5, %v72_v31 }
  0x2c   :  { %v123_v29 = vsel %vm120_vm5, %v122_v23, %v118_v28  ;;  %v132_v30 = vsel %vm131_vm6, %v226_v13, %v128_v27 }
  0x2d   :  { %v137_v32 = vsel %vm134_vm7, %v136_v26, %v132_v30  ;;  %v140_v33 = vmul.f32 %v345_v8, %v123_v29  ;;  %v96_v8 = vsel %vm364_vm10, %v93_v2, %v90_v63  ;;  %v156_v19 = vadd.f32 0.75, %v154_v12 }
  0x2e   :  { %v141_v35 = vmul.f32 %v347_v9, %v137_v32  ;;  %v106_v18 = vadd.f32 %v96_v8, %v86_v11  ;;  %v159_v30 = vmul.f32 %v157_v20, %v107_v22 }
  0x2f   :  { %v142_v36 = vsel %vm138_vm8, %v123_v29, %v140_v33 }
  0x30   :  { %v143_v37 = vsel %vm139_vm9, %v137_v32, %v141_v35  ;;  %v144_v38 = vadd.f32 %v142_v36, %v72_v31  ;;  %v146_v39 = vmul.f32 %v142_v36, %v72_v31  ;;  %v158_v28 = vmul.f32 %v156_v19, %v106_v18 }
  0x31   :  { %v145_v40 = vadd.f32 %v143_v37, %v73_v34  ;;  %v147_v41 = vmul.f32 %v143_v37, %v73_v34 }
  0x32   :  { %v148_v42 = vmul.f32 2.0, %v146_v39 }
  0x33   :  { %v149_v43 = vmul.f32 2.0, %v147_v41 }
  0x34   :  { %v150_v44 = vsub.f32 %v144_v38, %v148_v42 }
  0x35   :  { %v151_v45 = vsub.f32 %v145_v40, %v149_v43 }
  0x36   :  { %v152_v46 = vmax.f32 %v150_v44, 0.0 }
  0x37   :  { %v153_v47 = vmax.f32 %v151_v45, 0.0 }
  0x38   :  { %231 = vrsqrt.f32 %v152_v46  ;;  %vm167_vm12 = vcmp.eq.f32.partialorder %v152_v46, inf  ;;  %v170_v23 = vand.u32 2147483648, %v152_v46  ;;  %vm169_vm13 = vcmp.eq.f32.partialorder %v152_v46, 0.0 }
  0x39   :  { %233 = vrsqrt.f32 %v153_v47  ;;  %vm179_vm14 = vcmp.eq.f32.partialorder %v153_v47, inf  ;;  %v182_v26 = vand.u32 2147483648, %v153_v47  ;;  %vm181_vm15 = vcmp.eq.f32.partialorder %v153_v47, 0.0 }
  0x3e   :  { %v232_v55 = vpop.eup %231 }
  0x3f   :  { %v234_v57 = vpop.eup %233  ;;  %v161_v61 = vmul.f32 %v232_v55, %v152_v46 }
  0x40   :  { %v173_v3 = vmul.f32 %v234_v57, %v153_v47 }
  0x41   :  { %v162_v7 = vmul.f32 %v232_v55, %v161_v61 }
  0x42   :  { %v174_v0 = vmul.f32 %v234_v57, %v173_v3 }
  0x43   :  { %v163_v13 = vmul.f32 0.5, %v162_v7 }
  0x44   :  { %v175_v15 = vmul.f32 0.5, %v174_v0 }
  0x45   :  { %v164_v17 = vsub.f32 1.5, %v163_v13 }
  0x46   :  { %v176_v9 = vsub.f32 1.5, %v175_v15 }
  0x47   :  { %v165_v21 = vmul.f32 %v232_v55, %v164_v17 }
  0x48   :  { %v177_v24 = vmul.f32 %v234_v57, %v176_v9 }
  0x49   :  { %v166_v25 = vmul.f32 %v165_v21, %v152_v46 }
  0x4a   :  { %v178_v27 = vmul.f32 %v177_v24, %v153_v47 }
  0x4b   :  { %v168_v29 = vsel %vm167_vm12, %v152_v46, %v166_v25 }
  0x4c   :  { %v171_v31 = vsel %vm169_vm13, %v170_v23, %v168_v29  ;;  %v180_v32 = vsel %vm179_vm14, %v153_v47, %v178_v27 }
  0x4d   :  { %v183_v33 = vsel %vm181_vm15, %v182_v26, %v180_v32  ;;  %v184_v34 = vmul.f32 %v171_v31, %v152_v46 }
  0x4e   :  { %v185_v35 = vmul.f32 %v183_v33, %v153_v47 }
  0x4f   :  { %v186_v36 = vmul.f32 %v184_v34, %v158_v28 }
  0x50   :  { %v187_v37 = vmul.f32 %v185_v35, %v159_v30 }
  0x52   :  { %v188_v38 = vadd.f32 %v187_v37, %v186_v36 }
  0x54   :  { %190 = vst [vmem:[#allocation7] sm:$0xff] %v188_v38 }
  0x55   :  { %201 = dma.vmem_to_hbm [thread:$0]  %s197_s1, 128, %s199_s23, [#allocation4]  }
  0x56   :  { %311 = dma.done.wait [#allocation4], 128  }
  0x57   :  { %312 = vsyncadd [#allocation4], 4294967168 }
  0x58   :  { %206 = vsyncpa [#allocation3], 1 }
  0x59   :  { %207 = vsyncpa [#allocation6], 1 }
  0x5a   :  { %208 = vsyncpa [#allocation4], 1 }

</bundles_post_ra>
